<compile_context>
chip_gen: v5e
topology: v5e:2x2
jax: 0.10.0
libtpu: 0.0.40
codegen_flags: <defaults>
</compile_context>

<pallas_src>
import math
import functools

import jax
import jax.numpy as jnp
from jax import lax
from jax.experimental import pallas as pl
from jax.experimental.pallas import tpu as pltpu


def _mha_kernel(q_ref, k_ref, v_ref,
                wq_ref, bq_ref, wk_ref, bk_ref, wv_ref, bv_ref,
                wo_ref, bo_ref,
                out_ref, *, num_heads, dim_q, dim_k):
    # Activations for this (batch, seq-tile); cast to bf16 for the MXU.
    q_in = q_ref[0].astype(jnp.bfloat16)   # (Sq_blk, D_in)
    k_in = k_ref[0].astype(jnp.bfloat16)   # (Sk,     D_in)
    v_in = v_ref[0].astype(jnp.bfloat16)   # (Sk,     D_in)

    # Fused lane-dense projections: one matmul covers all heads (f32 accum).
    q = jnp.dot(q_in, wq_ref[...], preferred_element_type=jnp.float32) + bq_ref[...]
    k = jnp.dot(k_in, wk_ref[...], preferred_element_type=jnp.float32) + bk_ref[...]
    v = jnp.dot(v_in, wv_ref[...], preferred_element_type=jnp.float32) + bv_ref[...]

    # Fold the softmax scale into q: O(Sq*dim_q) instead of O(Sq*Sk).
    q = q * (1.0 / math.sqrt(dim_q))

    # Per-head attention over static lane slices of the fused projections
    # (unrolled; num_heads is small and static).
    head_outs = []
    for h in range(num_heads):
        qh = q[:, h * dim_q:(h + 1) * dim_q].astype(jnp.bfloat16)
        kh = k[:, h * dim_q:(h + 1) * dim_q].astype(jnp.bfloat16)
        vh = v[:, h * dim_k:(h + 1) * dim_k].astype(jnp.bfloat16)

        # q @ k^T via dot_general on the last dims -- no explicit transpose.
        s = lax.dot_general(qh, kh, (((1,), (1,)), ((), ())),
                            preferred_element_type=jnp.float32)    # (Sq_blk, Sk)

        # Numerically-stable softmax; normalize AFTER the PV matmul.
        s = s - jnp.max(s, axis=-1, keepdims=True)
        p = jnp.exp(s)
        denom = jnp.sum(p, axis=-1, keepdims=True)                  # (Sq_blk, 1)
        ho = jnp.dot(p.astype(jnp.bfloat16), vh,
                     preferred_element_type=jnp.float32)            # (Sq_blk, dim_k)
        head_outs.append(ho * pl.reciprocal(denom, approx=True))

    # concat-over-heads + output Linear as a single lane-dense matmul.
    head_cat = jnp.concatenate(head_outs, axis=-1).astype(jnp.bfloat16)
    out = jnp.dot(head_cat, wo_ref[...],
                  preferred_element_type=jnp.float32) + bo_ref[...]
    out_ref[0] = out.astype(out_ref.dtype)


def _pick_seq_block(seq_len, target):
    """Largest multiple of 8 that divides seq_len and is <= target (else full)."""
    if seq_len <= target:
        return seq_len
    blk = (target // 8) * 8
    while blk >= 8:
        if seq_len % blk == 0:
            return blk
        blk -= 8
    return seq_len


@functools.partial(jax.jit, static_argnames=("seq_block_target",))
def multi_head_attention(query, key, value, params, seq_block_target=512):
    """query/key/value: (B, S, dim_in) float32."""
    B, Sq, D_in = query.shape
    _, Sk, _ = key.shape
    H, _, dim_q = params["wq"].shape
    dim_k = params["wv"].shape[-1]

    f32, bf16 = jnp.float32, jnp.bfloat16

    # ---- fuse per-head weights: heads stacked along the output (lane) dim ----
    wq_f = jnp.transpose(params["wq"], (1, 0, 2)).reshape(D_in, H * dim_q).astype(bf16)
    wk_f = jnp.transpose(params["wk"], (1, 0, 2)).reshape(D_in, H * dim_q).astype(bf16)
    wv_f = jnp.transpose(params["wv"], (1, 0, 2)).reshape(D_in, H * dim_k).astype(bf16)
    bq_f = params["bq"].reshape(1, H * dim_q).astype(f32)
    bk_f = params["bk"].reshape(1, H * dim_q).astype(f32)
    bv_f = params["bv"].reshape(1, H * dim_k).astype(f32)
    wo_f = params["wo"].reshape(H * dim_k, D_in).astype(f32)
    bo_f = params["bo"].reshape(1, D_in).astype(f32)

    # Lane-dense output: zero-pad the output feature dim to a multiple of 128
    # (exact -- padded columns are identically zero), slice back afterwards.
    D_out = ((D_in + 127) // 128) * 128
    if D_out != D_in:
        wo_f = jnp.pad(wo_f, ((0, 0), (0, D_out - D_in)))
        bo_f = jnp.pad(bo_f, ((0, 0), (0, D_out - D_in)))
    wo_f = wo_f.astype(bf16)

    sq_blk = _pick_seq_block(Sq, seq_block_target)
    grid = (B, Sq // sq_blk)

    grid_spec = pltpu.PrefetchScalarGridSpec(
        num_scalar_prefetch=0,
        grid=grid,
        in_specs=[
            pl.BlockSpec((1, sq_blk, D_in), lambda b, s: (b, s, 0)),   # query tile
            pl.BlockSpec((1, Sk, D_in), lambda b, s: (b, 0, 0)),       # key
            pl.BlockSpec((1, Sk, D_in), lambda b, s: (b, 0, 0)),       # value
            pl.BlockSpec((D_in, H * dim_q), lambda b, s: (0, 0)),      # wq (resident)
            pl.BlockSpec((1, H * dim_q), lambda b, s: (0, 0)),         # bq
            pl.BlockSpec((D_in, H * dim_q), lambda b, s: (0, 0)),      # wk
            pl.BlockSpec((1, H * dim_q), lambda b, s: (0, 0)),         # bk
            pl.BlockSpec((D_in, H * dim_k), lambda b, s: (0, 0)),      # wv
            pl.BlockSpec((1, H * dim_k), lambda b, s: (0, 0)),         # bv
            pl.BlockSpec((H * dim_k, D_out), lambda b, s: (0, 0)),     # wo
            pl.BlockSpec((1, D_out), lambda b, s: (0, 0)),             # bo
        ],
        out_specs=pl.BlockSpec((1, sq_blk, D_out), lambda b, s: (b, s, 0)),
    )

    kernel = functools.partial(_mha_kernel, num_heads=H, dim_q=dim_q, dim_k=dim_k)

    out = pl.pallas_call(
        kernel,
        out_shape=jax.ShapeDtypeStruct((B, Sq, D_out), query.dtype),
        grid_spec=grid_spec,
        compiler_params=pltpu.CompilerParams(
            dimension_semantics=("parallel", "parallel"),
            vmem_limit_bytes=64 * 1024 * 1024),
    )(query, key, value, wq_f, bq_f, wk_f, bk_f, wv_f, bv_f, wo_f, bo_f)

    return out[..., :D_in]


def multi_head_attention_ref(query, key, value, params):
    """Plain-JAX f32 reference mirroring the PyTorch module."""
    H = params["wq"].shape[0]
    heads = []
    for h in range(H):
        q = query @ params["wq"][h] + params["bq"][h, 0]
        k = key @ params["wk"][h] + params["bk"][h, 0]
        v = value @ params["wv"][h] + params["bv"][h, 0]
        score = jnp.einsum("bqd,bkd->bqk", q, k) / math.sqrt(q.shape[-1])
        attn = jax.nn.softmax(score, axis=-1)
        heads.append(jnp.einsum("bqk,bkd->bqd", attn, v))
    cat = jnp.concatenate(heads, axis=-1)            # (B, Sq, H*dim_k)
    wo_flat = params["wo"].reshape(-1, params["wo"].shape[-1])
    return cat @ wo_flat + params["bo"][0]


def init_params(key, num_heads, dim_in, dim_q, dim_k):
    ks = jax.random.split(key, 8)
    def u(k, shape, fan_in):
        bound = 1.0 / math.sqrt(fan_in)
        return jax.random.uniform(k, shape, jnp.float32, -bound, bound)
    return {
        "wq": u(ks[0], (num_heads, dim_in, dim_q), dim_in),
        "bq": u(ks[1], (num_heads, 1, dim_q), dim_in),
        "wk": u(ks[2], (num_heads, dim_in, dim_q), dim_in),
        "bk": u(ks[3], (num_heads, 1, dim_q), dim_in),
        "wv": u(ks[4], (num_heads, dim_in, dim_k), dim_in),
        "bv": u(ks[5], (num_heads, 1, dim_k), dim_in),
        "wo": u(ks[6], (num_heads, dim_k, dim_in), num_heads * dim_k),
        "bo": u(ks[7], (1, dim_in), num_heads * dim_k),
    }


if __name__ == "__main__":
    num_heads, dim_in, dim_q, dim_k = 2, 32, 16, 16   # dim_q == dim_k (bmm requirement)
    B, Sq, Sk = 2, 8, 8

    root = jax.random.PRNGKey(0)
    kq, kk, kv, kp = jax.random.split(root, 4)
    query = jax.random.normal(kq, (B, Sq, dim_in), jnp.float32)
    key = jax.random.normal(kk, (B, Sk, dim_in), jnp.float32)
    value = jax.random.normal(kv, (B, Sk, dim_in), jnp.float32)
    params = init_params(kp, num_heads, dim_in, dim_q, dim_k)

    out = multi_head_attention(query, key, value, params)
    jax.block_until_ready(out)

    ref = multi_head_attention_ref(query, key, value, params)
    assert out.shape == (B, Sq, dim_in)
    # bf16 MXU inputs (f32 accumulation) -> relaxed tolerance vs f32 reference.
    assert jnp.allclose(out, ref, atol=3e-2, rtol=3e-2), "mismatch vs reference"

    print("KERNEL_OK")
</pallas_src>

<mosaic_0001>
module attributes {stable_mosaic.version = 11 : i64} {
  func.func @_mha_kernel(%arg0: i32, %arg1: i32, %arg2: memref<1x8x32xf32, #tpu.memory_space<vmem>>, %arg3: memref<1x8x32xf32, #tpu.memory_space<vmem>>, %arg4: memref<1x8x32xf32, #tpu.memory_space<vmem>>, %arg5: memref<32x32xbf16, #tpu.memory_space<vmem>>, %arg6: memref<1x32xf32, #tpu.memory_space<vmem>>, %arg7: memref<32x32xbf16, #tpu.memory_space<vmem>>, %arg8: memref<1x32xf32, #tpu.memory_space<vmem>>, %arg9: memref<32x32xbf16, #tpu.memory_space<vmem>>, %arg10: memref<1x32xf32, #tpu.memory_space<vmem>>, %arg11: memref<32x128xbf16, #tpu.memory_space<vmem>>, %arg12: memref<1x128xf32, #tpu.memory_space<vmem>>, %arg13: memref<1x8x128xf32, #tpu.memory_space<vmem>>) attributes {dimension_semantics = [#tpu.dimension_semantics<parallel>, #tpu.dimension_semantics<parallel>], iteration_bounds = array<i64: 2, 1>, scalar_prefetch = 0 : i64, scratch_operands = 0 : i64, tpu.core_type = #tpu.core_type<tc>, window_params = [{transform_indices = @transform_0, window_bounds = array<i64: 1, 8, 32>}, {transform_indices = @transform_1, window_bounds = array<i64: 1, 8, 32>}, {transform_indices = @transform_2, window_bounds = array<i64: 1, 8, 32>}, {pipeline_mode = #tpu.pipeline_mode<synchronous>, transform_indices = @transform_3, window_bounds = array<i64: 32, 32>}, {pipeline_mode = #tpu.pipeline_mode<synchronous>, transform_indices = @transform_4, window_bounds = array<i64: 1, 32>}, {pipeline_mode = #tpu.pipeline_mode<synchronous>, transform_indices = @transform_5, window_bounds = array<i64: 32, 32>}, {pipeline_mode = #tpu.pipeline_mode<synchronous>, transform_indices = @transform_6, window_bounds = array<i64: 1, 32>}, {pipeline_mode = #tpu.pipeline_mode<synchronous>, transform_indices = @transform_7, window_bounds = array<i64: 32, 32>}, {pipeline_mode = #tpu.pipeline_mode<synchronous>, transform_indices = @transform_8, window_bounds = array<i64: 1, 32>}, {pipeline_mode = #tpu.pipeline_mode<synchronous>, transform_indices = @transform_9, window_bounds = array<i64: 32, 128>}, {pipeline_mode = #tpu.pipeline_mode<synchronous>, transform_indices = @transform_10, window_bounds = array<i64: 1, 128>}, {transform_indices = @transform_11, window_bounds = array<i64: 1, 8, 128>}]} {
    %c0 = arith.constant 0 : index
    %c0_0 = arith.constant 0 : index
    %c0_1 = arith.constant 0 : index
    %0 = vector.load %arg2[%c0, %c0_0, %c0_1] : memref<1x8x32xf32, #tpu.memory_space<vmem>>, vector<1x8x32xf32>
    %1 = vector.shape_cast %0 : vector<1x8x32xf32> to vector<8x32xf32>
    %2 = arith.truncf %1 : vector<8x32xf32> to vector<8x32xbf16>
    %c0_2 = arith.constant 0 : index
    %c0_3 = arith.constant 0 : index
    %c0_4 = arith.constant 0 : index
    %3 = vector.load %arg3[%c0_2, %c0_3, %c0_4] : memref<1x8x32xf32, #tpu.memory_space<vmem>>, vector<1x8x32xf32>
    %4 = vector.shape_cast %3 : vector<1x8x32xf32> to vector<8x32xf32>
    %5 = arith.truncf %4 : vector<8x32xf32> to vector<8x32xbf16>
    %c0_5 = arith.constant 0 : index
    %c0_6 = arith.constant 0 : index
    %c0_7 = arith.constant 0 : index
    %6 = vector.load %arg4[%c0_5, %c0_6, %c0_7] : memref<1x8x32xf32, #tpu.memory_space<vmem>>, vector<1x8x32xf32>
    %7 = vector.shape_cast %6 : vector<1x8x32xf32> to vector<8x32xf32>
    %8 = arith.truncf %7 : vector<8x32xf32> to vector<8x32xbf16>
    %c0_8 = arith.constant 0 : index
    %c0_9 = arith.constant 0 : index
    %9 = vector.load %arg5[%c0_8, %c0_9] : memref<32x32xbf16, #tpu.memory_space<vmem>>, vector<32x32xbf16>
    %cst = arith.constant dense<0.000000e+00> : vector<8x32xf32>
    %10 = tpu.matmul %2, %9, %cst {dimension_numbers = #tpu.dot_dimension_numbers<[1], [0], [0], [1], [0, 0, 1, 1], [], []>} : vector<8x32xbf16>, vector<32x32xbf16>, vector<8x32xf32> -> vector<8x32xf32>
    %c0_10 = arith.constant 0 : index
    %c0_11 = arith.constant 0 : index
    %11 = vector.load %arg6[%c0_10, %c0_11] : memref<1x32xf32, #tpu.memory_space<vmem>>, vector<1x32xf32>
    %12 = vector.broadcast %11 : vector<1x32xf32> to vector<8x32xf32>
    %13 = arith.addf %10, %12 : vector<8x32xf32>
    %c0_12 = arith.constant 0 : index
    %c0_13 = arith.constant 0 : index
    %14 = vector.load %arg7[%c0_12, %c0_13] : memref<32x32xbf16, #tpu.memory_space<vmem>>, vector<32x32xbf16>
    %cst_14 = arith.constant dense<0.000000e+00> : vector<8x32xf32>
    %15 = tpu.matmul %5, %14, %cst_14 {dimension_numbers = #tpu.dot_dimension_numbers<[1], [0], [0], [1], [0, 0, 1, 1], [], []>} : vector<8x32xbf16>, vector<32x32xbf16>, vector<8x32xf32> -> vector<8x32xf32>
    %c0_15 = arith.constant 0 : index
    %c0_16 = arith.constant 0 : index
    %16 = vector.load %arg8[%c0_15, %c0_16] : memref<1x32xf32, #tpu.memory_space<vmem>>, vector<1x32xf32>
    %17 = vector.broadcast %16 : vector<1x32xf32> to vector<8x32xf32>
    %18 = arith.addf %15, %17 : vector<8x32xf32>
    %c0_17 = arith.constant 0 : index
    %c0_18 = arith.constant 0 : index
    %19 = vector.load %arg9[%c0_17, %c0_18] : memref<32x32xbf16, #tpu.memory_space<vmem>>, vector<32x32xbf16>
    %cst_19 = arith.constant dense<0.000000e+00> : vector<8x32xf32>
    %20 = tpu.matmul %8, %19, %cst_19 {dimension_numbers = #tpu.dot_dimension_numbers<[1], [0], [0], [1], [0, 0, 1, 1], [], []>} : vector<8x32xbf16>, vector<32x32xbf16>, vector<8x32xf32> -> vector<8x32xf32>
    %c0_20 = arith.constant 0 : index
    %c0_21 = arith.constant 0 : index
    %21 = vector.load %arg10[%c0_20, %c0_21] : memref<1x32xf32, #tpu.memory_space<vmem>>, vector<1x32xf32>
    %22 = vector.broadcast %21 : vector<1x32xf32> to vector<8x32xf32>
    %23 = arith.addf %20, %22 : vector<8x32xf32>
    %cst_22 = arith.constant 2.500000e-01 : f32
    %24 = vector.broadcast %cst_22 : f32 to vector<8x32xf32>
    %25 = arith.mulf %13, %24 : vector<8x32xf32>
    %26 = vector.extract_strided_slice %25 {offsets = [0, 0], sizes = [8, 16], strides = [1, 1]} : vector<8x32xf32> to vector<8x16xf32>
    %27 = arith.truncf %26 : vector<8x16xf32> to vector<8x16xbf16>
    %28 = vector.extract_strided_slice %18 {offsets = [0, 0], sizes = [8, 16], strides = [1, 1]} : vector<8x32xf32> to vector<8x16xf32>
    %29 = arith.truncf %28 : vector<8x16xf32> to vector<8x16xbf16>
    %30 = vector.extract_strided_slice %23 {offsets = [0, 0], sizes = [8, 16], strides = [1, 1]} : vector<8x32xf32> to vector<8x16xf32>
    %31 = arith.truncf %30 : vector<8x16xf32> to vector<8x16xbf16>
    %cst_23 = arith.constant dense<0.000000e+00> : vector<8x8xf32>
    %32 = tpu.matmul %27, %29, %cst_23 {dimension_numbers = #tpu.dot_dimension_numbers<[1], [1], [0], [0], [0, 0, 1, 0], [], []>} : vector<8x16xbf16>, vector<8x16xbf16>, vector<8x8xf32> -> vector<8x8xf32>
    %cst_24 = arith.constant dense<0xFF800000> : vector<8xf32>
    %33 = vector.multi_reduction <maximumf>, %32, %cst_24 [1] : vector<8x8xf32> to vector<8xf32>
    %34 = vector.shape_cast %33 : vector<8xf32> to vector<8x1xf32>
    %35 = vector.broadcast %34 : vector<8x1xf32> to vector<8x8xf32>
    %36 = arith.subf %32, %35 : vector<8x8xf32>
    %37 = math.exp %36 : vector<8x8xf32>
    %cst_25 = arith.constant dense<0.000000e+00> : vector<8xf32>
    %38 = vector.multi_reduction <add>, %37, %cst_25 [1] : vector<8x8xf32> to vector<8xf32>
    %39 = vector.shape_cast %38 : vector<8xf32> to vector<8x1xf32>
    %40 = arith.truncf %37 : vector<8x8xf32> to vector<8x8xbf16>
    %cst_26 = arith.constant dense<0.000000e+00> : vector<8x16xf32>
    %41 = tpu.matmul %40, %31, %cst_26 {dimension_numbers = #tpu.dot_dimension_numbers<[1], [0], [0], [1], [0, 0, 1, 1], [], []>} : vector<8x8xbf16>, vector<8x16xbf16>, vector<8x16xf32> -> vector<8x16xf32>
    %42 = tpu.reciprocal %39 {approx = true} : vector<8x1xf32> -> vector<8x1xf32>
    %43 = vector.broadcast %42 : vector<8x1xf32> to vector<8x16xf32>
    %44 = arith.mulf %41, %43 : vector<8x16xf32>
    %45 = vector.extract_strided_slice %25 {offsets = [0, 16], sizes = [8, 16], strides = [1, 1]} : vector<8x32xf32> to vector<8x16xf32>
    %46 = arith.truncf %45 : vector<8x16xf32> to vector<8x16xbf16>
    %47 = vector.extract_strided_slice %18 {offsets = [0, 16], sizes = [8, 16], strides = [1, 1]} : vector<8x32xf32> to vector<8x16xf32>
    %48 = arith.truncf %47 : vector<8x16xf32> to vector<8x16xbf16>
    %49 = vector.extract_strided_slice %23 {offsets = [0, 16], sizes = [8, 16], strides = [1, 1]} : vector<8x32xf32> to vector<8x16xf32>
    %50 = arith.truncf %49 : vector<8x16xf32> to vector<8x16xbf16>
    %cst_27 = arith.constant dense<0.000000e+00> : vector<8x8xf32>
    %51 = tpu.matmul %46, %48, %cst_27 {dimension_numbers = #tpu.dot_dimension_numbers<[1], [1], [0], [0], [0, 0, 1, 0], [], []>} : vector<8x16xbf16>, vector<8x16xbf16>, vector<8x8xf32> -> vector<8x8xf32>
    %cst_28 = arith.constant dense<0xFF800000> : vector<8xf32>
    %52 = vector.multi_reduction <maximumf>, %51, %cst_28 [1] : vector<8x8xf32> to vector<8xf32>
    %53 = vector.shape_cast %52 : vector<8xf32> to vector<8x1xf32>
    %54 = vector.broadcast %53 : vector<8x1xf32> to vector<8x8xf32>
    %55 = arith.subf %51, %54 : vector<8x8xf32>
    %56 = math.exp %55 : vector<8x8xf32>
    %cst_29 = arith.constant dense<0.000000e+00> : vector<8xf32>
    %57 = vector.multi_reduction <add>, %56, %cst_29 [1] : vector<8x8xf32> to vector<8xf32>
    %58 = vector.shape_cast %57 : vector<8xf32> to vector<8x1xf32>
    %59 = arith.truncf %56 : vector<8x8xf32> to vector<8x8xbf16>
    %cst_30 = arith.constant dense<0.000000e+00> : vector<8x16xf32>
    %60 = tpu.matmul %59, %50, %cst_30 {dimension_numbers = #tpu.dot_dimension_numbers<[1], [0], [0], [1], [0, 0, 1, 1], [], []>} : vector<8x8xbf16>, vector<8x16xbf16>, vector<8x16xf32> -> vector<8x16xf32>
    %61 = tpu.reciprocal %58 {approx = true} : vector<8x1xf32> -> vector<8x1xf32>
    %62 = vector.broadcast %61 : vector<8x1xf32> to vector<8x16xf32>
    %63 = arith.mulf %60, %62 : vector<8x16xf32>
    %64 = tpu.concatenate %44, %63 in 1 : vector<8x16xf32>, vector<8x16xf32> -> vector<8x32xf32>
    %65 = arith.truncf %64 : vector<8x32xf32> to vector<8x32xbf16>
    %c0_31 = arith.constant 0 : index
    %c0_32 = arith.constant 0 : index
    %66 = vector.load %arg11[%c0_31, %c0_32] : memref<32x128xbf16, #tpu.memory_space<vmem>>, vector<32x128xbf16>
    %cst_33 = arith.constant dense<0.000000e+00> : vector<8x128xf32>
    %67 = tpu.matmul %65, %66, %cst_33 {dimension_numbers = #tpu.dot_dimension_numbers<[1], [0], [0], [1], [0, 0, 1, 1], [], []>} : vector<8x32xbf16>, vector<32x128xbf16>, vector<8x128xf32> -> vector<8x128xf32>
    %c0_34 = arith.constant 0 : index
    %c0_35 = arith.constant 0 : index
    %68 = vector.load %arg12[%c0_34, %c0_35] : memref<1x128xf32, #tpu.memory_space<vmem>>, vector<1x128xf32>
    %69 = vector.broadcast %68 : vector<1x128xf32> to vector<8x128xf32>
    %70 = arith.addf %67, %69 : vector<8x128xf32>
    %c0_36 = arith.constant 0 : index
    %c0_37 = arith.constant 0 : index
    %c0_38 = arith.constant 0 : index
    %71 = vector.load %arg13[%c0_36, %c0_37, %c0_38] : memref<1x8x128xf32, #tpu.memory_space<vmem>>, vector<1x8x128xf32>
    %72 = vector.shape_cast %71 : vector<1x8x128xf32> to vector<8x128xf32>
    %73 = vector.shape_cast %70 : vector<8x128xf32> to vector<1x8x128xf32>
    tpu.vector_store %arg13[%c0_36, %c0_37, %c0_38], %73 {strides = array<i32>} : memref<1x8x128xf32, #tpu.memory_space<vmem>>, vector<1x8x128xf32>,
    return
  }
  func.func @transform_0(%arg0: i32, %arg1: i32) -> (i32, i32, i32) {
    %c0_i32 = arith.constant 0 : i32
    %c0_i32_0 = arith.constant 0 : i32
    return %arg0, %arg1, %c0_i32 : i32, i32, i32
  }
  func.func @transform_1(%arg0: i32, %arg1: i32) -> (i32, i32, i32) {
    %c0_i32 = arith.constant 0 : i32
    %c0_i32_0 = arith.constant 0 : i32
    %c0_i32_1 = arith.constant 0 : i32
    return %arg0, %c0_i32, %c0_i32_0 : i32, i32, i32
  }
  func.func @transform_2(%arg0: i32, %arg1: i32) -> (i32, i32, i32) {
    %c0_i32 = arith.constant 0 : i32
    %c0_i32_0 = arith.constant 0 : i32
    %c0_i32_1 = arith.constant 0 : i32
    return %arg0, %c0_i32, %c0_i32_0 : i32, i32, i32
  }
  func.func @transform_3(%arg0: i32, %arg1: i32) -> (i32, i32) {
    %c0_i32 = arith.constant 0 : i32
    %c0_i32_0 = arith.constant 0 : i32
    %c0_i32_1 = arith.constant 0 : i32
    return %c0_i32, %c0_i32_0 : i32, i32
  }
  func.func @transform_4(%arg0: i32, %arg1: i32) -> (i32, i32) {
    %c0_i32 = arith.constant 0 : i32
    %c0_i32_0 = arith.constant 0 : i32
    %c0_i32_1 = arith.constant 0 : i32
    return %c0_i32, %c0_i32_0 : i32, i32
  }
  func.func @transform_5(%arg0: i32, %arg1: i32) -> (i32, i32) {
    %c0_i32 = arith.constant 0 : i32
    %c0_i32_0 = arith.constant 0 : i32
    %c0_i32_1 = arith.constant 0 : i32
    return %c0_i32, %c0_i32_0 : i32, i32
  }
  func.func @transform_6(%arg0: i32, %arg1: i32) -> (i32, i32) {
    %c0_i32 = arith.constant 0 : i32
    %c0_i32_0 = arith.constant 0 : i32
    %c0_i32_1 = arith.constant 0 : i32
    return %c0_i32, %c0_i32_0 : i32, i32
  }
  func.func @transform_7(%arg0: i32, %arg1: i32) -> (i32, i32) {
    %c0_i32 = arith.constant 0 : i32
    %c0_i32_0 = arith.constant 0 : i32
    %c0_i32_1 = arith.constant 0 : i32
    return %c0_i32, %c0_i32_0 : i32, i32
  }
  func.func @transform_8(%arg0: i32, %arg1: i32) -> (i32, i32) {
    %c0_i32 = arith.constant 0 : i32
    %c0_i32_0 = arith.constant 0 : i32
    %c0_i32_1 = arith.constant 0 : i32
    return %c0_i32, %c0_i32_0 : i32, i32
  }
  func.func @transform_9(%arg0: i32, %arg1: i32) -> (i32, i32) {
    %c0_i32 = arith.constant 0 : i32
    %c0_i32_0 = arith.constant 0 : i32
    %c0_i32_1 = arith.constant 0 : i32
    return %c0_i32, %c0_i32_0 : i32, i32
  }
  func.func @transform_10(%arg0: i32, %arg1: i32) -> (i32, i32) {
    %c0_i32 = arith.constant 0 : i32
    %c0_i32_0 = arith.constant 0 : i32
    %c0_i32_1 = arith.constant 0 : i32
    return %c0_i32, %c0_i32_0 : i32, i32
  }
  func.func @transform_11(%arg0: i32, %arg1: i32) -> (i32, i32, i32) {
    %c0_i32 = arith.constant 0 : i32
    %c0_i32_0 = arith.constant 0 : i32
    return %arg0, %arg1, %c0_i32 : i32, i32, i32
  }
}

</mosaic_0001>

<bundles_post_ra>
// kernel: multi_head_attention.1
= control target key start
LH: loop header
LB: loop body
LE: loop exit
PB: predicated region body
PF: predicated region fallthrough
CT: control target
= control target key end

     0   :  { %s1264_s0 = inlined_call_operand.vmem [shape: f32[2,8,32], index: 0, kind: input, shape index: {}]   ;;  %s1265_s1 = inlined_call_operand.vmem [shape: f32[2,8,32], index: 1, kind: input, shape index: {}]   ;;  %s1266_s2 = inlined_call_operand.vmem [shape: f32[2,8,32], index: 2, kind: input, shape index: {}]   ;;  %s1267_s3 = inlined_call_operand.vmem [shape: bf16[32,32], index: 3, kind: input, shape index: {}]   ;;  %s1268_s4 = inlined_call_operand.vmem [shape: f32[1,32], index: 4, kind: input, shape index: {}]   ;;  %s1269_s5 = inlined_call_operand.vmem [shape: bf16[32,32], index: 5, kind: input, shape index: {}]   ;;  %s1270_s6 = inlined_call_operand.vmem [shape: f32[1,32], index: 6, kind: input, shape index: {}]   ;;  %s1271_s7 = inlined_call_operand.vmem [shape: bf16[32,32], index: 7, kind: input, shape index: {}]   ;;  %s1272_s8 = inlined_call_operand.vmem [shape: f32[1,32], index: 8, kind: input, shape index: {}]   ;;  %s1273_s9 = inlined_call_operand.vmem [shape: bf16[32,128], index: 9, kind: input, shape index: {}]   ;;  %s1274_s10 = inlined_call_operand.vmem [shape: f32[1,128], index: 10, kind: input, shape index: {}]   ;;  %s1275_s11 = inlined_call_operand.hbm [shape: f32[2,8,128], index: 11, kind: output, shape index: {}]  }
   0x1   :  { %1278 = sst [smem:[#allocation7_spill]] %s1264_s0 }
   0x2   :  { %1279 = sst [smem:[#allocation8_spill]] %s1265_s1 }
   0x3   :  { %16 = vsyncpa [#allocation3], 0 }
   0x4   :  { %18 = vsyncpa [#allocation3 + $0x1], 0  ;;  %s1100_s17 = smov 0   ;;  %s1102_s18 = smov 0  }
   0x5   :  { %s1104_s19 = smov 0   ;;  %s1106_s20 = smov 0  }
   0x6   :  { %s1108_s21 = smov 0   ;;  %s1110_s22 = smov 0  }
   0x7 LB: > { %1280 = sst [smem:[#allocation5_spill]] %s1032_s21  ;;  %s828_s23 = sadd.s32 4294967295, %s1036_s22   ;;  %s1036_s22 = sphi %s1110_s22, %s24_s22   ;;  %s1032_s21 = sphi %s1108_s21, %s1287_s21   ;;  %s1028_s20 = sphi %s1106_s20, %s1286_s20   ;;  %s1024_s19 = sphi %s1104_s19, %s1290_s19   ;;  %s1020_s18 = sphi %s1102_s18, %s1289_s18   ;;  %s1016_s17 = sphi %s1100_s17, %s1288_s17  }
   0x8   : > { %s829_s24 = sadd.s32 4294967294, %s1036_s22   ;;  %s36_s25 = sadd.s32 1, %s1032_s21 }
   0x9   : > { %s293_s26 = sadd.s32 1, %s1024_s19  ;;  %p38_p0 = scmp.ge.s32.totalorder %s36_s25, 2 }
   0xa   : > { %p303_p1 = scmp.ne.s32.totalorder %s1024_s19, %s1020_s18  ;;  %p304_p2 = scmp.eq.s32.totalorder %s828_s23, 1 }
   0xb   : > { %p309_p3 = scmp.ne.s32.totalorder %s1020_s18, %s1016_s17  ;;  %s1292_s25 = smov (%p38_p0, %s36_s25), 0 }
   0xc   : > { %1281 = sst [smem:[#allocation6_spill]] %s1292_s25  ;;  %p1140_p4 = por %p304_p2, %p303_p1 }
   0xd   : > { %p310_p5 = scmp.eq.s32.totalorder %s829_s24, 1  ;;  %s288_s28 = ssub.s32 %s1032_s21, %s1292_s25 }
   0xe   : > { %p832_p6 = scmp.ge.s32.totalorder %s1036_s22, 1  ;;  %p291_p7 = scmp.eq.s32.totalorder %s288_s28, 0 }
   0xf   : > { %p1147_p8 = por %p310_p5, %p309_p3  ;;  %p376_p9 = scmp.lt.s32.totalorder %s1036_s22, 3 }
  0x10   : > { %s1153_s30 = scalar_select %p291_p7, %s1024_s19, %s293_s26  }
  0x11   : > { %p377_p10 = pnand %p832_p6, %p376_p9 }
  0x12   : > { %p426_p11 = scmp.lt.s32.totalorder (!%p377_p10), %s1028_s20, 1  ;;  %s1284_s0 = sld [smem:[#allocation7_spill]] (!%p377_p10) }
  0x13   : > { %380 = sbr.rel (%p377_p10) target bundleno = 925 (0x39d), region = 64  ;;  %s1285_s1 = sld [smem:[#allocation8_spill]] (!%p377_p10) }
  0x14   : > { %s1038_s21 = smov (!%p377_p10), 112   ;;  %s423_s15 = sand.u32 (!%p377_p10), 1, %s1020_s18  }
  0x15   : > { %s833_s23 = sshll.u32 (!%p377_p10), %s423_s15, 3 }
  0x18   : > { %v882_v0 = vld [vmem:[%s1267_s3 + $0x8] sm:$0xff]  ;;  %v881_v2 = vld [vmem:[%s1267_s3] sm:$0xff]  ;;  %s427_s28 = scalar_select %p426_p11, %s1028_s20, 1  ;;  %vm468_vm0 = vcmask 261120   ;;  %vm561_vm1 = vcmask 130048   ;;  %vm581_vm2 = vcmask 64512  }
  0x19   : > { %v884_v1 = vld [vmem:[%s1269_s5 + $0x8] sm:$0xff]  ;;  %478 = vmatpush.bf16.msra.mxu0 %v882_v0  ;;  %v883_v3 = vld [vmem:[%s1269_s5] sm:$0xff]  ;;  %vm595_vm3 = vcmask 1043456  }
  0x1a   : > { %514 = vmatpush.bf16.msra.mxu1 %v884_v1  ;;  %s1169_s12 = sshll.u32 %s427_s28, 3  ;;  %v946_v8 = vld [vmem:[%s1268_s4] ss:$0 sm:$0xff]  ;;  %v886_v20 = vld [vmem:[%s1271_s7 + $0x8] sm:$0xff] }
  0x1b   : > { %s432_s14 = scalar_lea.vmem %s1284_s0, %s1169_s12  ;;  %s436_s16 = scalar_lea.vmem %s1285_s1, %s1169_s12  ;;  %v947_v9 = vld [vmem:[%s1270_s6] ss:$0 sm:$0xff]  ;;  %550 = vmatpush.bf16.msra.mxu2 %v886_v20  ;;  %v888_v55 = vld [vmem:[%s1273_s9 + $0x8] sm:$0xff] }
  0x1c   : > { %v442_v4 = vld [vmem:[%s432_s14] sm:$0xff]  ;;  %s440_s14 = scalar_lea.vmem %s1266_s2, %s1169_s12  ;;  %s717_s0 = scalar_lea.sflag [#allocation3], %s423_s15 }
  0x1d   : > { %479 = vmatpush.bf16.msra.mxu0 %v881_v2  ;;  %v444_v5 = vld [vmem:[%s436_s16] sm:$0xff]  ;;  %v443_v6 = vpack.c.bf16 %v442_v4, %v442_v4  ;;  %s878_s16 = sshll.u32 %s1028_s20, 3  ;;  %s978_s12 = scalar_lea.hbm %s1275_s11, 16 }
  0x1e   : > { %515 = vmatpush.bf16.msra.mxu1 %v883_v3  ;;  %v445_v7 = vpack.c.bf16 %v444_v5, %v444_v5  ;;  %v885_v21 = vld [vmem:[%s1271_s7] sm:$0xff]  ;;  %s728_s25 = scalar_lea.hbm %s1275_s11, %s878_s16 }
  0x1f   : > { %v446_v22 = vld [vmem:[%s440_s14] sm:$0xff]  ;;  %551 = vmatpush.bf16.msra.mxu2 %v885_v21  ;;  %s732_s14 = sshll.u32 %s728_s25, 4  ;;  %s733_s14 = int_to_ptr.hbm [resolvable:$true] %s732_s14 }
  0x20   : > { %845 = vmatmul.msk.bf16.vlgmr.msra.gmra.mxu0 %vm468_vm0, %v443_v6  ;;  %v447_v23 = vpack.c.bf16 %v446_v22, %v446_v22  ;;  %v948_v30 = vld [vmem:[%s1272_s8] ss:$0 sm:$0xff]  ;;  %s972_s20 = sshra.s32 %s733_s14, 4  ;;  %s973_s20 = int_to_ptr.hbm [resolvable:$true] %s972_s20 }
  0x21   : > { %854 = vmatmul.msk.bf16.vlgmr.msra.gmra.mxu1 %vm468_vm0, %v445_v7  ;;  %v887_v61 = vld [vmem:[%s1273_s9] sm:$0xff]  ;;  %s974_s1 = scalar_lea.hbm %s973_s20, 8  ;;  %p979_p1 = scmp.lt.s32.totalorder %s973_s20, %s1275_s11 }
  0x22   : > { %863 = vmatmul.msk.bf16.vlgmr.msra.gmra.mxu2 %vm468_vm0, %v447_v23  ;;  %v949_v4 = vld [vmem:[%s1274_s10] ss:$0 sm:$0xff]  ;;  %p975_p12 = scmp.ne.s32.totalorder %s973_s20, %s974_s1  ;;  %p980_p2 = scmp.lt.s32.totalorder %s978_s12, %s974_s1 }
  0x24   : > { %p976_p13 = pnand %p975_p12, %p1140_p4  ;;  %p981_p3 = por %p980_p2, %p979_p1 }
  0x26   : > { %p977_p0 = pneg %p976_p13 }
  0x28   : > { %p982_p5 = pnand %p981_p3, %p977_p0 }
  0x9d   : > { %v481_v10 = vpop.f32.mrf.mxu0 }
  0x9e   : > { %v517_v11 = vpop.f32.mrf.mxu1  ;;  %v482_v12 = vadd.f32 %v946_v8, %v481_v10 }
  0x9f   : > { %v518_v13 = vadd.f32 %v947_v9, %v517_v11 }
  0xa0   : > { %v557_v15 = vmul.f32 0.25, %v482_v12 }
  0xa1   : > { %v559_v14 = vpack.c.bf16 %v518_v13, %v518_v13 }
  0xa2   : > { %v558_v19 = vpack.c.bf16 %v557_v15, %v557_v15 }
  0xa3   : > { %618 = vrot.lane.b32.xlu0 %v559_v14, %s1038_s21  ;;  %v566_v16 = vsel %vm561_vm1, %v559_v14, 0 }
  0xa4   : > { %575 = vmatpush.bf16.xpose.msra.mxu3 %v566_v16 }
  0xa5   : > { %v483_v17 = vpop.f32.mrf.mxu0  ;;  %v553_v31 = vpop.f32.mrf.mxu2 }
  0xa6   : > { %v519_v18 = vpop.f32.mrf.mxu1  ;;  %v554_v32 = vadd.f32 %v948_v30, %v553_v31 }
  0xa8   : > { %v560_v33 = vpack.c.bf16 %v554_v32, %v554_v32 }
  0xaa   : > { %v597_v34 = vsel %vm595_vm3, %v560_v33, 0 }
  0xab   : > { %615 = vrot.lane.b32.xlu0 %v558_v19, %s1038_s21  ;;  %864 = vmatmul.msk.bf16.vlgmr.msra.gmra.mxu3 %vm561_vm1, %v558_v19 }
  0xac   : > { %606 = vmatpush.bf16.msrb.mxu0 %v597_v34  ;;  %708 = vmatpush.bf16.msrb.mxu3 %v888_v55 }
  0xad   : > { %v555_v35 = vpop.f32.mrf.mxu2 }
  0xb0   : > { %709 = vmatpush.bf16.msrb.mxu3 %v887_v61 }
 0x115   : > { %v619_v24 = vpop.permute.xlu0 %618 }
 0x116   : > { %v624_v25 = vsel %vm561_vm1, %v619_v24, 0 }
 0x117   : > { %633 = vmatpush.bf16.xpose.msrb.mxu1 %v624_v25 }
 0x11d   : > { %v616_v26 = vpop.permute.xlu0 %615 }
 0x11e   : > { %866 = vmatmul.msk.bf16.vlgmr.msrb.gmra.mxu1 %vm561_vm1, %v616_v26 }
 0x12e   : > { %v577_v27 = vpop.f32.mrf.mxu3 }
 0x12f   : > { %v582_v28 = vsel %vm581_vm2, %v577_v27, -inf }
 0x130   : > { %583 = vmax.xlane.f32.xlu2 %v582_v28 }
 0x136   : > { %v579_v29 = vpop.f32.mrf.mxu3 }
 0x19b   : > { %v635_v36 = vpop.f32.mrf.mxu1 }
 0x19c   : > { %v639_v37 = vsel %vm581_vm2, %v635_v36, -inf }
 0x19d   : > { %640 = vmax.xlane.f32.xlu1 %v639_v37 }
 0x1a3   : > { %v637_v38 = vpop.f32.mrf.mxu1  ;;  %v584_v39 = vpop.xlane.xlu2 %583 }
 0x1a4   : > { %v585_v40 = vsub.f32 %v577_v27, %v584_v39 }
 0x1a6   : > { %v586_v41 = vmul.f32 1.442695, %v585_v40 }
 0x1a8   : > { %950 = vpow2.f32 %v586_v41 }
 0x1ae   : > { %v951_v42 = vpop.eup %950 }
 0x1af   : > { %v588_v43 = vsel %vm581_vm2, %v951_v42, 0.0  ;;  %v591_v44 = vpack.c.bf16 %v951_v42, %v951_v42 }
 0x1b0   : > { %589 = vadd.xlane.f32.xlu0 %v588_v43 }
 0x1b1   : > { %865 = vmatmul.msk.bf16.vlgmr.msrb.gmra.mxu0 %vm581_vm2, %v591_v44 }
 0x1b6   : > { %650 = vrot.lane.b32.xlu1 %v560_v33, %s1038_s21  ;;  %s1039_s21 = smov 16  }
 0x210   : > { %v641_v45 = vpop.xlane.xlu1 %640 }
 0x211   : > { %v642_v46 = vsub.f32 %v635_v36, %v641_v45 }
 0x213   : > { %v643_v47 = vmul.f32 1.442695, %v642_v46 }
 0x215   : > { %952 = vpow2.f32 %v643_v47 }
 0x21b   : > { %v953_v48 = vpop.eup %952 }
 0x21c   : > { %v645_v49 = vsel %vm581_vm2, %v953_v48, 0.0  ;;  %v648_v52 = vpack.c.bf16 %v953_v48, %v953_v48 }
 0x21d   : > { %646 = vadd.xlane.f32.xlu2 %v645_v49 }
 0x223   : > { %v590_v62 = vpop.xlane.xlu0 %589 }
 0x228   : > { %v651_v50 = vpop.permute.xlu1 %650 }
 0x229   : > { %v656_v51 = vsel %vm595_vm3, %v651_v50, 0 }
 0x22a   : > { %665 = vmatpush.bf16.msrb.mxu2 %v656_v51 }
 0x22d   : > { %867 = vmatmul.msk.bf16.vlgmr.msrb.gmra.mxu2 %vm581_vm2, %v648_v52 }
 0x22e   : > { %v608_v53 = vpop.f32.mrf.mxu0 }
 0x236   : > { %v610_v54 = vpop.f32.mrf.mxu0 }
 0x290   : > { %v647_v56 = vpop.xlane.xlu2 %646 }
 0x291   : > { %954 = vrcp.f32 %v647_v56 }
 0x292   : > { %956 = vrcp.f32 %v590_v62 }
 0x297   : > { %v955_v57 = vpop.eup %954 }
 0x298   : > { %v957_v63 = vpop.eup %956 }
 0x299   : > { %v613_v0 = vmul.f32 %v957_v63, %v608_v53 }
 0x2b0   : > { %v667_v58 = vpop.f32.mrf.mxu2 }
 0x2b1   : > { %v672_v59 = vmul.f32 %v955_v57, %v667_v58 }
 0x2b3   : > { %674 = vrot.lane.b32.xlu2 %v672_v59, %s1039_s21  ;;  %s425_s21 = scalar_lea.vmem [#allocation2], %s833_s23 }
 0x2b4   : > { %s730_s13 = sshll.u32 %s425_s21, 4  ;;  %s731_s13 = int_to_ptr.vmem [resolvable:$true] %s730_s13 }
 0x2b8   : > { %v669_v60 = vpop.f32.mrf.mxu2 }
 0x30d   : > { %v675_v1 = vpop.permute.xlu2 %674 }
 0x30e   : > { %v677_v2 = vsel %vm561_vm1, %v613_v0, %v675_v1 }
 0x30f   : > { %v678_v3 = vpack.c.bf16 %v677_v2, %v677_v2 }
 0x311   : > { %876 = vmatmul.msk.bf16.vlgmr.msrb.gmra.mxu3 %vm468_vm0, %v678_v3 }
 0x394   : > { %v711_v5 = vpop.f32.mrf.mxu3 }
 0x395   : > { %v712_v6 = vadd.f32 %v949_v4, %v711_v5 }
 0x397   : > { %715 = vst [vmem:[%s425_s21] sm:$0xff] %v712_v6 }
 0x398   : > { %985 = shalt.err (!%p982_p5)
}
 0x399   : > { %889 = dma.vmem_to_hbm [thread:$0]  (%p1140_p4), %s731_s13, 128, %s733_s14, %s717_s0  }
 0x39c   : > { %v713_v7 = vpop.f32.mrf.mxu3 }
 0x39d PF: > { %p895_p6 = scmp.ge.s32.totalorder %s1036_s22, 2  ;;  %s744_s15 = sand.u32 1, %s1016_s17  }
 0x39e   : > { %s745_s25 = scalar_lea.sflag [#allocation3], %s744_s15 }
 0x39f   : > { %p892_p7 = pnand %p895_p6, %p1147_p8 }
 0x3a1   : > { %p893_p9 = pneg %p892_p7 }
 0x3a3   : > { %1011 = dma.done.wait (%p893_p9), %s745_s25, 128  }
 0x3a4   : > { %1013 = vsyncadd (%p893_p9), %s745_s25, 4294967168  ;;  %s24_s22 = sadd.s32 1, %s1036_s22   ;;  %s1286_s20 = sld [smem:[#allocation5_spill]] }
 0x3a5   : > { %p21_p10 = scmp.ge.s32.totalorder %s24_s22, 4   ;;  %s1287_s21 = sld [smem:[#allocation6_spill]] }
 0x3a6   : > { %s1288_s17 = smov %s1020_s18  ;;  %s1289_s18 = smov %s1024_s19 }
 0x3a7   : > { %s1290_s19 = smov %s1153_s30  ;;  %23 = sbr.rel (!%p21_p10) target bundleno = 7 (0x7), region = 105 }
 0x3ac   :  { %751 = vsyncpa [#allocation3], 1 }
 0x3ad   :  { %753 = vsyncpa [#allocation3 + $0x1], 1 }

</bundles_post_ra>
